<compile_context>
chip_gen: v7x
topology: tpu7x:2x2x1
jax: 0.10.0
libtpu: 0.0.40
codegen_flags: <defaults>
</compile_context>

<pallas_src>
import functools

import jax
import jax.numpy as jnp
from jax.experimental import pallas as pl
from jax.experimental.pallas import tpu as pltpu

HID1 = 128   # fc1 out
HID2 = 64    # fc2 out
LANE = 128   # TPU lane width


def _round_up(n, m):
    return ((n + m - 1) // m) * m


def _dqn_kernel(d_in_pad, x_ref, w_ref, b_ref, o_ref):
    """One batch tile: three MXU matmuls (bf16 in, f32 acc) + f32 bias/ReLU."""
    x = x_ref[...]                                     # (TB, d_in_pad) bf16

    w1 = w_ref[0:d_in_pad, :]                          # (d_in_pad, 128) bf16
    w2 = w_ref[d_in_pad:d_in_pad + LANE, :]            # (128, 128) bf16 (cols 64: are 0)
    w3 = w_ref[d_in_pad + LANE:d_in_pad + 2 * LANE, :] # (128, 128) bf16 (rows 64:, cols out: are 0)

    b1 = b_ref[0:1, :]                                 # (1, 128) f32
    b2 = b_ref[1:2, :]
    b3 = b_ref[2:3, :]

    h1 = jnp.dot(x, w1, preferred_element_type=jnp.float32) + b1
    h1 = jnp.maximum(h1, 0.0)                          # f32 VPU

    h2 = jnp.dot(h1.astype(jnp.bfloat16), w2, preferred_element_type=jnp.float32) + b2
    h2 = jnp.maximum(h2, 0.0)                          # cols 64: stay exactly 0 (zero pad)

    y = jnp.dot(h2.astype(jnp.bfloat16), w3, preferred_element_type=jnp.float32) + b3
    o_ref[...] = y                                     # (TB, 128) f32, lane-dense store


def dqn_forward(x, w_packed, b_packed, *, output_size, block_b=512):
    """x: (B, input_size) f32. Returns (B, output_size) f32 Q-values."""
    B, d_in = x.shape
    d_in_pad = w_packed.shape[0] - 2 * LANE
    w_rows = w_packed.shape[0]

    # Batch tile: multiple of 8 sublanes, capped at block_b.
    TB = min(block_b, _round_up(max(B, 1), 8))
    B_pad = _round_up(B, TB)

    xp = x.astype(jnp.bfloat16)
    if B_pad != B or d_in_pad != d_in:
        xp = jnp.zeros((B_pad, d_in_pad), jnp.bfloat16).at[:B, :d_in].set(xp)

    grid = (B_pad // TB,)
    kernel = functools.partial(_dqn_kernel, d_in_pad)

    out = pl.pallas_call(
        kernel,
        out_shape=jax.ShapeDtypeStruct((B_pad, LANE), jnp.float32),
        grid=grid,
        in_specs=[
            pl.BlockSpec((TB, d_in_pad), lambda i: (i, 0)),   # x: walks batch
            pl.BlockSpec((w_rows, LANE), lambda i: (0, 0)),   # weights: VMEM-resident
            pl.BlockSpec((3, LANE), lambda i: (0, 0)),        # biases: VMEM-resident
        ],
        out_specs=pl.BlockSpec((TB, LANE), lambda i: (i, 0)),
        compiler_params=pltpu.CompilerParams(
            dimension_semantics=("parallel",),
        ),
    )(xp, w_packed, b_packed)

    return out[:B, :output_size]


def init_params(key, input_size, output_size):
    """Deterministic synthetic params (PyTorch-like uniform fan-in), f32."""
    ks = jax.random.split(key, 6)
    dims = [(input_size, HID1), (HID1, HID2), (HID2, output_size)]
    params = {}
    for i, (din, dout) in enumerate(dims, start=1):
        bound = 1.0 / (din ** 0.5)
        params[f"w{i}"] = jax.random.uniform(
            ks[2 * (i - 1)], (din, dout), jnp.float32, -bound, bound)
        params[f"b{i}"] = jax.random.uniform(
            ks[2 * (i - 1) + 1], (dout,), jnp.float32, -bound, bound)
    return params


def pack_params(params, input_size, output_size):
    """Pack weights into one bf16 (d_in_pad + 256, 128) buffer and biases into (3, 128) f32."""
    d_in_pad = _round_up(max(input_size, 1), 8)

    w1p = jnp.zeros((d_in_pad, LANE), jnp.float32).at[:input_size, :HID1].set(params["w1"])
    w2p = jnp.zeros((LANE, LANE), jnp.float32).at[:HID1, :HID2].set(params["w2"])
    w3p = jnp.zeros((LANE, LANE), jnp.float32).at[:HID2, :output_size].set(params["w3"])
    w_packed = jnp.concatenate([w1p, w2p, w3p], axis=0).astype(jnp.bfloat16)

    b_packed = jnp.zeros((3, LANE), jnp.float32)
    b_packed = b_packed.at[0, :HID1].set(params["b1"])
    b_packed = b_packed.at[1, :HID2].set(params["b2"])
    b_packed = b_packed.at[2, :output_size].set(params["b3"])
    return w_packed, b_packed


def dqn_reference(x, params):
    """Pure-JAX reference with the same bf16-at-dot-boundary / f32-accumulate math."""
    def lin(a, w, b):
        return jnp.dot(a.astype(jnp.bfloat16), w.astype(jnp.bfloat16),
                       preferred_element_type=jnp.float32) + b
    h1 = jnp.maximum(lin(x, params["w1"], params["b1"]), 0.0)
    h2 = jnp.maximum(lin(h1, params["w2"], params["b2"]), 0.0)
    return lin(h2, params["w3"], params["b3"])


if __name__ == "__main__":
    input_size = 16
    output_size = 4
    batch = 2

    key = jax.random.PRNGKey(0)
    k_x, k_p, k_x2 = jax.random.split(key, 3)

    params = init_params(k_p, input_size, output_size)
    w_packed, b_packed = pack_params(params, input_size, output_size)

    # Small-batch check (grid = 1 step).
    x = jax.random.normal(k_x, (batch, input_size), jnp.float32)
    out = dqn_forward(x, w_packed, b_packed, output_size=output_size)
    out = jax.block_until_ready(out)
    ref = dqn_reference(x, params)
    assert out.shape == (batch, output_size)
    assert jnp.allclose(out, ref, atol=1e-2, rtol=1e-2), "mismatch vs reference (small batch)"

    # Larger batch: exercises multi-step grid, resident weights, and batch padding.
    xb = jax.random.normal(k_x2, (1000, input_size), jnp.float32)
    outb = dqn_forward(xb, w_packed, b_packed, output_size=output_size, block_b=256)
    outb = jax.block_until_ready(outb)
    refb = dqn_reference(xb, params)
    assert outb.shape == (1000, output_size)
    assert jnp.allclose(outb, refb, atol=1e-2, rtol=1e-2), "mismatch vs reference (large batch)"

    print("KERNEL_OK")
</pallas_src>

<mosaic_0001>
module attributes {stable_mosaic.version = 11 : i64} {
  func.func @_dqn_kernel(%arg0: i32, %arg1: memref<8x16xbf16, #tpu.memory_space<vmem>>, %arg2: memref<272x128xbf16, #tpu.memory_space<vmem>>, %arg3: memref<3x128xf32, #tpu.memory_space<vmem>>, %arg4: memref<8x128xf32, #tpu.memory_space<vmem>>) attributes {dimension_semantics = [#tpu.dimension_semantics<parallel>], iteration_bounds = array<i64: 1>, scalar_prefetch = 0 : i64, scratch_operands = 0 : i64, tpu.core_type = #tpu.core_type<tc>, window_params = [{transform_indices = @transform_0, window_bounds = array<i64: 8, 16>}, {pipeline_mode = #tpu.pipeline_mode<synchronous>, transform_indices = @transform_1, window_bounds = array<i64: 272, 128>}, {pipeline_mode = #tpu.pipeline_mode<synchronous>, transform_indices = @transform_2, window_bounds = array<i64: 3, 128>}, {transform_indices = @transform_3, window_bounds = array<i64: 8, 128>}]} {
    %c0 = arith.constant 0 : index
    %c0_0 = arith.constant 0 : index
    %0 = vector.load %arg1[%c0, %c0_0] : memref<8x16xbf16, #tpu.memory_space<vmem>>, vector<8x16xbf16>
    %c0_1 = arith.constant 0 : index
    %c0_2 = arith.constant 0 : index
    %1 = vector.load %arg2[%c0_1, %c0_2] : memref<272x128xbf16, #tpu.memory_space<vmem>>, vector<16x128xbf16>
    %c16 = arith.constant 16 : index
    %c0_3 = arith.constant 0 : index
    %2 = vector.load %arg2[%c16, %c0_3] : memref<272x128xbf16, #tpu.memory_space<vmem>>, vector<128x128xbf16>
    %c144 = arith.constant 144 : index
    %c0_4 = arith.constant 0 : index
    %3 = vector.load %arg2[%c144, %c0_4] : memref<272x128xbf16, #tpu.memory_space<vmem>>, vector<128x128xbf16>
    %c0_5 = arith.constant 0 : index
    %c0_6 = arith.constant 0 : index
    %4 = vector.load %arg3[%c0_5, %c0_6] : memref<3x128xf32, #tpu.memory_space<vmem>>, vector<1x128xf32>
    %c1 = arith.constant 1 : index
    %c0_7 = arith.constant 0 : index
    %5 = vector.load %arg3[%c1, %c0_7] : memref<3x128xf32, #tpu.memory_space<vmem>>, vector<1x128xf32>
    %c2 = arith.constant 2 : index
    %c0_8 = arith.constant 0 : index
    %6 = vector.load %arg3[%c2, %c0_8] : memref<3x128xf32, #tpu.memory_space<vmem>>, vector<1x128xf32>
    %cst = arith.constant dense<0.000000e+00> : vector<8x128xf32>
    %7 = tpu.matmul %0, %1, %cst {dimension_numbers = #tpu.dot_dimension_numbers<[1], [0], [0], [1], [0, 0, 1, 1], [], []>} : vector<8x16xbf16>, vector<16x128xbf16>, vector<8x128xf32> -> vector<8x128xf32>
    %8 = vector.broadcast %4 : vector<1x128xf32> to vector<8x128xf32>
    %9 = arith.addf %7, %8 : vector<8x128xf32>
    %cst_9 = arith.constant 0.000000e+00 : f32
    %10 = vector.broadcast %cst_9 : f32 to vector<8x128xf32>
    %11 = arith.maximumf %9, %10 : vector<8x128xf32>
    %12 = arith.truncf %11 : vector<8x128xf32> to vector<8x128xbf16>
    %cst_10 = arith.constant dense<0.000000e+00> : vector<8x128xf32>
    %13 = tpu.matmul %12, %2, %cst_10 {dimension_numbers = #tpu.dot_dimension_numbers<[1], [0], [0], [1], [0, 0, 1, 1], [], []>} : vector<8x128xbf16>, vector<128x128xbf16>, vector<8x128xf32> -> vector<8x128xf32>
    %14 = vector.broadcast %5 : vector<1x128xf32> to vector<8x128xf32>
    %15 = arith.addf %13, %14 : vector<8x128xf32>
    %cst_11 = arith.constant 0.000000e+00 : f32
    %16 = vector.broadcast %cst_11 : f32 to vector<8x128xf32>
    %17 = arith.maximumf %15, %16 : vector<8x128xf32>
    %18 = arith.truncf %17 : vector<8x128xf32> to vector<8x128xbf16>
    %cst_12 = arith.constant dense<0.000000e+00> : vector<8x128xf32>
    %19 = tpu.matmul %18, %3, %cst_12 {dimension_numbers = #tpu.dot_dimension_numbers<[1], [0], [0], [1], [0, 0, 1, 1], [], []>} : vector<8x128xbf16>, vector<128x128xbf16>, vector<8x128xf32> -> vector<8x128xf32>
    %20 = vector.broadcast %6 : vector<1x128xf32> to vector<8x128xf32>
    %21 = arith.addf %19, %20 : vector<8x128xf32>
    %c0_13 = arith.constant 0 : index
    %c0_14 = arith.constant 0 : index
    %22 = vector.load %arg4[%c0_13, %c0_14] : memref<8x128xf32, #tpu.memory_space<vmem>>, vector<8x128xf32>
    tpu.vector_store %arg4[%c0_13, %c0_14], %21 {strides = array<i32>} : memref<8x128xf32, #tpu.memory_space<vmem>>, vector<8x128xf32>,
    return
  }
  func.func @transform_0(%arg0: i32) -> (i32, i32) {
    %c0_i32 = arith.constant 0 : i32
    %c0_i32_0 = arith.constant 0 : i32
    return %arg0, %c0_i32 : i32, i32
  }
  func.func @transform_1(%arg0: i32) -> (i32, i32) {
    %c0_i32 = arith.constant 0 : i32
    %c0_i32_0 = arith.constant 0 : i32
    %c0_i32_1 = arith.constant 0 : i32
    return %c0_i32, %c0_i32_0 : i32, i32
  }
  func.func @transform_2(%arg0: i32) -> (i32, i32) {
    %c0_i32 = arith.constant 0 : i32
    %c0_i32_0 = arith.constant 0 : i32
    %c0_i32_1 = arith.constant 0 : i32
    return %c0_i32, %c0_i32_0 : i32, i32
  }
  func.func @transform_3(%arg0: i32) -> (i32, i32) {
    %c0_i32 = arith.constant 0 : i32
    %c0_i32_0 = arith.constant 0 : i32
    return %arg0, %c0_i32 : i32, i32
  }
}

</mosaic_0001>

<bundles_post_ra>
// kernel: tpu_custom_call.1
= control target key start
LH: loop header
LB: loop body
LE: loop exit
PB: predicated region body
PF: predicated region fallthrough
CT: control target
= control target key end

     0   :  { %8 = vsyncpa [#allocation3], 0  ;;  %s621_s0 = inlined_call_operand.hbm [shape: bf16[8,16], index: 0, kind: input, shape index: {}]   ;;  %s622_s1 = inlined_call_operand.hbm [shape: bf16[272,128], index: 1, kind: input, shape index: {}]   ;;  %s623_s2 = inlined_call_operand.vmem [shape: f32[3,128], index: 2, kind: input, shape index: {}]   ;;  %s624_s3 = inlined_call_operand.hbm [shape: f32[8,128], index: 3, kind: output, shape index: {}]  }
   0x1   :  { %9 = vsyncpa [#allocation6], 0 }
   0x2   :  { %10 = vsyncpa [#allocation4], 0  ;;  %s522_s12 = smov [#allocation2]   ;;  %s523_s14 = smov [#allocation5]  }
   0x3   :  { %s17_s13 = sshll.u32 %s522_s12, 4  ;;  %s26_s15 = sshll.u32 %s523_s14, 4  ;;  %s18_s13 = int_to_ptr.vmem [resolvable:$true] %s17_s13  ;;  %s549_s15 = int_to_ptr.vmem [resolvable:$true] %s26_s15 }
   0x4   :  { %s450_s18 = scalar_lea.hbm %s621_s0, 64 }
   0x5   :  { %p451_p0 = scmp.ne.s32.totalorder %s621_s0, %s450_s18  ;;  %p454_p1 = scmp.lt.u32.totalorder %s450_s18, %s621_s0 }
   0x7   :  { %p456_p2 = pnand %p454_p1, %p451_p0 }
   0x9   :  { %459 = shalt.err (!%p456_p2)
}
   0xa   :  { %s460_s23 = scalar_lea.vmem %s18_s13, 64  ;;  %p465_p4 = scmp.lt.s32.totalorder %s18_s13, %s18_s13 }
   0xb   :  { %p461_p3 = scmp.ne.s32.totalorder %s18_s13, %s460_s23  ;;  %p466_p5 = scmp.lt.s32.totalorder %s460_s23, %s460_s23 }
   0xd   :  { %p467_p6 = por %p466_p5, %p465_p4 }
   0xf   :  { %p468_p7 = pnand %p467_p6, %p461_p3 }
  0x11   :  { %471 = shalt.err (!%p468_p7)
}
  0x12   :  { %20 = dma.hbm_to_vmem [thread:$0]  %s621_s0, 64, %s18_s13, [#allocation3]  }
  0x13   :  { %s472_s28 = scalar_lea.hbm %s622_s1, 2176 }
  0x14   :  { %p473_p8 = scmp.ne.s32.totalorder %s622_s1, %s472_s28  ;;  %p476_p9 = scmp.lt.u32.totalorder %s472_s28, %s622_s1 }
  0x16   :  { %p478_p10 = pnand %p476_p9, %p473_p8 }
  0x18   :  { %481 = shalt.err (!%p478_p10)
}
  0x19   :  { %s482_s6 = scalar_lea.vmem %s549_s15, 2176  ;;  %p487_p12 = scmp.lt.s32.totalorder %s549_s15, %s549_s15 }
  0x1a   :  { %p483_p11 = scmp.ne.s32.totalorder %s549_s15, %s482_s6  ;;  %p488_p13 = scmp.lt.s32.totalorder %s482_s6, %s482_s6 }
  0x1c   :  { %p489_p0 = por %p488_p13, %p487_p12 }
  0x1e   :  { %p490_p1 = pnand %p489_p0, %p483_p11 }
  0x20   :  { %493 = shalt.err (!%p490_p1)
}
  0x21   :  { %s524_s0 = smov 64   ;;  %s525_s7 = smov 4  }
  0x22   :  { %32 = dma.hbm_to_vmem [thread:$0]  %s622_s1, 2176, %s549_s15, [#allocation6], %s524_s0, %s524_s0, %s525_s7  }
  0x23   :  { %516 = dma.done.wait [#allocation3], 64  }
  0x24   :  { %517 = vsyncadd [#allocation3], 4294967232 }
  0x25   :  { %518 = dma.done.wait [#allocation6], 2176  }
  0x26   :  { %519 = vsyncadd [#allocation6], 4294965120  ;;  %v526_v0 = vmov 0.0   ;;  %vm527_vm0 = vmmov 0   ;;  %v433_v1 = vld [vmem:[#allocation5] sm:$0xff]   ;;  %vm90_vm1 = vcmask 130048  }
  0x27   :  { %380 = vmatprep.subr.bf16.mxu0 %v526_v0  ;;  %382 = vmatprep.mubr.msk.bf16.mxu0 %vm527_vm0, %v526_v0  ;;  %v42_v2 = vld [vmem:[#allocation2] sm:$0xf]  ;;  %v434_v3 = vld [vmem:[#allocation5 + $0x8] sm:$0xff]   ;;  %v435_v4 = vld [vmem:[#allocation5 + $0x10] sm:$0xff]   ;;  %s528_s15 = smov [#allocation7]  }
  0x28   :  { %386 = vmatprep.subr.bf16.mxu1 %v526_v0  ;;  %402 = vmatprep.mubr.msk.bf16.mxu1 %vm527_vm0, %v526_v0  ;;  %v436_v5 = vld [vmem:[#allocation5 + $0x18] sm:$0xff]   ;;  %v437_v6 = vld [vmem:[#allocation5 + $0x20] sm:$0xff]   ;;  %v438_v7 = vld [vmem:[#allocation5 + $0x28] sm:$0xff]   ;;  %s329_s16 = sshll.u32 %s528_s15, 4  ;;  %s330_s16 = int_to_ptr.vmem [resolvable:$true] %s329_s16 }
  0x29   :  { %381 = vmatpush3.bf16.msra.mxu0 %v433_v1  ;;  %387 = vmatpush3.bf16.msra.mxu1 %v434_v3  ;;  %v439_v8 = vld [vmem:[#allocation5 + $0x30] sm:$0xff]   ;;  %v440_v9 = vld [vmem:[#allocation5 + $0x38] sm:$0xff]   ;;  %v441_v10 = vld [vmem:[#allocation5 + $0x40] sm:$0xff]   ;;  %s494_s17 = scalar_lea.vmem %s330_s16, 128  ;;  %p499_p3 = scmp.lt.s32.totalorder %s330_s16, %s330_s16 }
  0x2a   :  { %406 = vmatprep.subr.bf16.mxu0 %v526_v0  ;;  %388 = vmatprep.subr.bf16.mxu1 %v526_v0  ;;  %v442_v11 = vld [vmem:[#allocation5 + $0x48] sm:$0xff]   ;;  %v443_v12 = vld [vmem:[#allocation5 + $0x50] sm:$0xff]   ;;  %v444_v13 = vld [vmem:[#allocation5 + $0x58] sm:$0xff]   ;;  %p495_p2 = scmp.ne.s32.totalorder %s330_s16, %s494_s17  ;;  %p500_p4 = scmp.lt.s32.totalorder %s494_s17, %s494_s17 }
  0x2b   :  { %v445_v14 = vld [vmem:[#allocation5 + $0x60] sm:$0xff]   ;;  %v446_v15 = vld [vmem:[#allocation5 + $0x68] sm:$0xff]   ;;  %v447_v16 = vld [vmem:[#allocation5 + $0x70] sm:$0xff]  }
  0x2c   :  { %383 = vmatmul.mubr.msk.bf16.vlgmr.msra.gmra.mrb[0].mxu0 %vm90_vm1, %v42_v2  ;;  %v339_v17 = vld [vmem:[%s623_s2] ss:$0 sm:$0xff]  ;;  %v449_v26 = vld [vmem:[#allocation5 + $0x80] sm:$0xff]   ;;  %v342_v27 = vld [vmem:[%s623_s2 + $0x1] ss:$0 sm:$0xff]  ;;  %p501_p5 = por %p500_p4, %p499_p3 }
  0x2d   :  { %422 = vmatprep.mubr.msk.bf16.mxu0 %vm527_vm0, %v526_v0  ;;  %389 = vmatpush3.bf16.msra.mxu1 %v435_v4  ;;  %v448_v25 = vld [vmem:[#allocation5 + $0x78] sm:$0xff]  }
  0x2e   :  { %390 = vmatprep.subr.bf16.mxu1 %v526_v0  ;;  %407 = vmatpush3.bf16.msra.mxu0 %v442_v11  ;;  %v351_v35 = vld [vmem:[%s623_s2 + $0x2] ss:$0 sm:$0xff]  ;;  %p502_p6 = pnand %p501_p5, %p495_p2 }
  0x2f   :  { %408 = vmatprep.subr.bf16.mxu0 %v526_v0 }
  0x31   :  { %391 = vmatpush3.bf16.msra.mxu1 %v436_v5 }
  0x32   :  { %392 = vmatprep.subr.bf16.mxu1 %v526_v0  ;;  %409 = vmatpush3.bf16.msra.mxu0 %v443_v12 }
  0x33   :  { %410 = vmatprep.subr.bf16.mxu0 %v526_v0 }
  0x35   :  { %393 = vmatpush3.bf16.msra.mxu1 %v437_v6 }
  0x36   :  { %394 = vmatprep.subr.bf16.mxu1 %v526_v0  ;;  %411 = vmatpush3.bf16.msra.mxu0 %v444_v13 }
  0x37   :  { %412 = vmatprep.subr.bf16.mxu0 %v526_v0 }
  0x39   :  { %395 = vmatpush3.bf16.msra.mxu1 %v438_v7 }
  0x3a   :  { %396 = vmatprep.subr.bf16.mxu1 %v526_v0  ;;  %413 = vmatpush3.bf16.msra.mxu0 %v445_v14 }
  0x3b   :  { %414 = vmatprep.subr.bf16.mxu0 %v526_v0 }
  0x3d   :  { %397 = vmatpush3.bf16.msra.mxu1 %v439_v8 }
  0x3e   :  { %398 = vmatprep.subr.bf16.mxu1 %v526_v0  ;;  %415 = vmatpush3.bf16.msra.mxu0 %v446_v15 }
  0x3f   :  { %416 = vmatprep.subr.bf16.mxu0 %v526_v0 }
  0x41   :  { %399 = vmatpush3.bf16.msra.mxu1 %v440_v9 }
  0x42   :  { %400 = vmatprep.subr.bf16.mxu1 %v526_v0  ;;  %417 = vmatpush3.bf16.msra.mxu0 %v447_v16 }
  0x43   :  { %418 = vmatprep.subr.bf16.mxu0 %v526_v0 }
  0x45   :  { %401 = vmatpush3.bf16.msra.mxu1 %v441_v10 }
  0x46   :  { %419 = vmatpush3.bf16.msra.mxu0 %v448_v25 }
  0x47   :  { %420 = vmatprep.subr.bf16.mxu0 %v526_v0 }
  0x4a   :  { %421 = vmatpush3.bf16.msra.mxu0 %v449_v26 }
  0xff   :  { %v128_v18 = vpop.f32.mrb[0].mxu0 }
 0x100   :  { %v129_v19 = vadd.f32 %v339_v17, %v128_v18  ;;  %v384_v20 = vpop.f32.mrb[1].mxu0 }
 0x101   :  { %v131_v21 = vpop.f32.mrb[2].mxu0 }
 0x102   :  { %v134_v22 = vmax.f32 %v129_v19, 0.0  ;;  %v385_v23 = vpop.f32.mrb[3].mxu0 }
 0x104   :  { %v135_v24 = vpack.c.bf16 %v134_v22, %v134_v22 }
 0x106   :  { %403 = vmatmul.mubr.bf16.vlgmr.msra.gmra.mrb[0].mxu1 %v135_v24 }
 0x1d9   :  { %v222_v28 = vpop.f32.mrb[0].mxu1 }
 0x1da   :  { %v223_v29 = vadd.f32 %v342_v27, %v222_v28  ;;  %v404_v30 = vpop.f32.mrb[1].mxu1 }
 0x1db   :  { %v225_v31 = vpop.f32.mrb[2].mxu1 }
 0x1dc   :  { %v228_v32 = vmax.f32 %v223_v29, 0.0  ;;  %v405_v33 = vpop.f32.mrb[3].mxu1 }
 0x1de   :  { %v229_v34 = vpack.c.bf16 %v228_v32, %v228_v32 }
 0x1e0   :  { %423 = vmatmul.mubr.bf16.vlgmr.msra.gmra.mrb[4].mxu0 %v229_v34 }
 0x2b3   :  { %v316_v36 = vpop.f32.mrb[4].mxu0 }
 0x2b4   :  { %v317_v37 = vadd.f32 %v351_v35, %v316_v36  ;;  %v424_v38 = vpop.f32.mrb[5].mxu0 }
 0x2b5   :  { %v319_v39 = vpop.f32.mrb[6].mxu0 }
 0x2b6   :  { %322 = vst [vmem:[#allocation7] sm:$0xff] %v317_v37  ;;  %v425_v40 = vpop.f32.mrb[7].mxu0 }
 0x2b7   :  { %505 = shalt.err (!%p502_p6)
}
 0x2b8   :  { %s506_s2 = scalar_lea.hbm %s624_s3, 128 }
 0x2b9   :  { %p507_p7 = scmp.ne.s32.totalorder %s624_s3, %s506_s2  ;;  %p510_p8 = scmp.lt.u32.totalorder %s506_s2, %s624_s3 }
 0x2bb   :  { %p512_p9 = pnand %p510_p8, %p507_p7 }
 0x2bd   :  { %515 = shalt.err (!%p512_p9)
}
 0x2be   :  { %332 = dma.vmem_to_hbm [thread:$0]  %s330_s16, 128, %s624_s3, [#allocation4]  }
 0x2bf   :  { %520 = dma.done.wait [#allocation4], 128  }
 0x2c0   :  { %521 = vsyncadd [#allocation4], 4294967168 }
 0x2c1   :  { %336 = vsyncpa [#allocation3], 1 }
 0x2c2   :  { %337 = vsyncpa [#allocation6], 1 }
 0x2c3   :  { %338 = vsyncpa [#allocation4], 1 }

</bundles_post_ra>
